<compile_context>
chip_gen: v7x
topology: tpu7x:2x2x1
jax: 0.10.0
libtpu: 0.0.40
codegen_flags: <defaults>
</compile_context>

<pallas_src>
import functools

import jax
import jax.numpy as jnp
from jax.experimental import pallas as pl
from jax.experimental.pallas import tpu as pltpu

SELU_ALPHA = 1.6732632423543772
SELU_SCALE = 1.0507009873554805
PATCH = 3        # conv2 output size on a 1x1 input: (1-1)*1 - 0 + 3 = 3
HIDDEN = 128     # conv1 out_channels


def _round_up(x, m):
    return (x + m - 1) // m * m


def _selu(x):
    return SELU_SCALE * jnp.where(x > 0, x, SELU_ALPHA * (jnp.exp(x) - 1.0))


def _decoder_kernel(x_ref, w1_ref, b1_ref, w2_ref, b2_ref, o_ref):
    # bf16 on the MXU, f32 accumulation and activations.
    x = x_ref[...].astype(jnp.bfloat16)
    h = jnp.dot(x, w1_ref[...], preferred_element_type=jnp.float32) + b1_ref[...]
    h = _selu(h)
    h = jnp.dot(h.astype(jnp.bfloat16), w2_ref[...],
                preferred_element_type=jnp.float32) + b2_ref[...]
    h = _selu(h)
    # Sigmoid (exp + reciprocal run on the EUP); padded columns hold 0.5 and are
    # sliced off in the wrapper.
    o_ref[...] = 1.0 / (1.0 + jnp.exp(-h))


@functools.partial(jax.jit, static_argnames=("n_output", "block_b"))
def bernoulli_decoder_a8_forward(x, params, *, n_output, block_b=128):
    """x: (n_samples, n_batch, n_latent) f32 -> means (n_samples, n_batch, n_output, 3, 3)."""
    n_samples, n_batch, n_latent = x.shape
    w1, b1, w2, b2 = params["w1"], params["b1"], params["w2"], params["b2"]
    c_pad = w2.shape[1]                       # lane-dense (multiple of 128) output width

    n = n_samples * n_batch
    xf = x.reshape(n, n_latent).astype(jnp.float32)

    tb = min(block_b, _round_up(n, 8))        # batch tile (multiple of 8 sublanes)
    n_pad = _round_up(n, tb)
    if n_pad != n:
        xf = jnp.pad(xf, ((0, n_pad - n), (0, 0)))

    out = pl.pallas_call(
        _decoder_kernel,
        out_shape=jax.ShapeDtypeStruct((n_pad, c_pad), jnp.float32),
        grid_spec=pltpu.PrefetchScalarGridSpec(
            num_scalar_prefetch=0,
            grid=(n_pad // tb,),
            in_specs=[
                pl.BlockSpec((tb, n_latent), lambda i: (i, 0)),       # x tile (pipelined)
                pl.BlockSpec((n_latent, HIDDEN), lambda i: (0, 0)),   # weights resident
                pl.BlockSpec((1, HIDDEN), lambda i: (0, 0)),
                pl.BlockSpec((HIDDEN, c_pad), lambda i: (0, 0)),
                pl.BlockSpec((1, c_pad), lambda i: (0, 0)),
            ],
            out_specs=pl.BlockSpec((tb, c_pad), lambda i: (i, 0)),
        ),
        compiler_params=pltpu.CompilerParams(
            dimension_semantics=("parallel",)),
    )(xf, w1, b1, w2, b2)

    out = out[:n, : n_output * PATCH * PATCH]
    return out.reshape(n_samples, n_batch, n_output, PATCH, PATCH)


def init_params(key, n_input, n_output):
    """Synthetic torch-layout ConvTranspose2d params, collapsed to lane-dense linear form."""
    ks = jax.random.split(key, 4)

    def unif(k, shape, fan):
        bound = 1.0 / jnp.sqrt(jnp.float32(fan))
        return jax.random.uniform(k, shape, jnp.float32, -bound, bound)

    # torch ConvTranspose2d weight layout: (C_in, C_out, kH, kW)
    cw1 = unif(ks[0], (n_input, HIDDEN, 3, 3), n_input * 9)
    cb1 = unif(ks[1], (HIDDEN,), n_input * 9)
    cw2 = unif(ks[2], (HIDDEN, n_output, 3, 3), HIDDEN * 9)
    cb2 = unif(ks[3], (n_output,), HIDDEN * 9)

    # conv1 with padding=1 on a 1x1 map -> only the centre tap contributes.
    w1 = cw1[:, :, 1, 1]                                   # (n_input, 128)
    b1 = cb1.reshape(1, HIDDEN)

    # conv2 with no padding on a 1x1 map -> each of the 3x3 output pixels is an
    # independent linear map; flatten (o, kh, kw) so the post-slice reshape
    # matches torch's (C, H, W) memory order.
    n_flat = n_output * PATCH * PATCH
    w2 = cw2.reshape(HIDDEN, n_flat)                       # (128, n_output*9)
    b2 = jnp.repeat(cb2, PATCH * PATCH).reshape(1, n_flat)

    # Pad output axis to a multiple of 128 so kernel stores are lane-dense.
    c_pad = _round_up(n_flat, 128)
    w2 = jnp.pad(w2, ((0, 0), (0, c_pad - n_flat)))
    b2 = jnp.pad(b2, ((0, 0), (0, c_pad - n_flat)))

    return dict(
        w1=w1.astype(jnp.bfloat16), b1=b1,
        w2=w2.astype(jnp.bfloat16), b2=b2,
    )


def reference_forward(x, params, n_output):
    """Pure-JAX reference with the same bf16 casts as the kernel."""
    n_s, n_b, n_l = x.shape
    xf = x.reshape(-1, n_l).astype(jnp.bfloat16).astype(jnp.float32)
    w1 = params["w1"].astype(jnp.float32)
    w2 = params["w2"].astype(jnp.float32)
    h = _selu(xf @ w1 + params["b1"])
    h = _selu(h.astype(jnp.bfloat16).astype(jnp.float32) @ w2 + params["b2"])
    out = jax.nn.sigmoid(h)[:, : n_output * PATCH * PATCH]
    return out.reshape(n_s, n_b, n_output, PATCH, PATCH)


if __name__ == "__main__":
    key = jax.random.PRNGKey(0)
    k_param, k_x = jax.random.split(key)

    # x is (n_samples, n_batch, n_latent); n_input == n_latent for this decoder.
    n_samples, n_batch, n_latent, n_output = 2, 8, 16, 4

    params = init_params(k_param, n_latent, n_output)
    x = jax.random.normal(k_x, (n_samples, n_batch, n_latent), jnp.float32)

    # block_b=8 gives a 2-step batch grid at these demo sizes (exercises the
    # parallel grid + resident-weight pipelining paths).
    means = bernoulli_decoder_a8_forward(x, params, n_output=n_output, block_b=8)
    jax.block_until_ready(means)

    assert means.shape == (n_samples, n_batch, n_output, PATCH, PATCH)
    assert bool(jnp.all((means >= 0.0) & (means <= 1.0)))

    ref = reference_forward(x, params, n_output)
    assert bool(jnp.allclose(means, ref, atol=1e-2, rtol=1e-2)), float(
        jnp.max(jnp.abs(means - ref)))

    print("KERNEL_OK")
</pallas_src>

<mosaic_0001>
module attributes {stable_mosaic.version = 11 : i64} {
  func.func @_decoder_kernel(%arg0: i32, %arg1: memref<8x16xf32, #tpu.memory_space<vmem>>, %arg2: memref<16x128xbf16, #tpu.memory_space<vmem>>, %arg3: memref<1x128xf32, #tpu.memory_space<vmem>>, %arg4: memref<128x128xbf16, #tpu.memory_space<vmem>>, %arg5: memref<1x128xf32, #tpu.memory_space<vmem>>, %arg6: memref<8x128xf32, #tpu.memory_space<vmem>>) attributes {dimension_semantics = [#tpu.dimension_semantics<parallel>], iteration_bounds = array<i64: 2>, scalar_prefetch = 0 : i64, scratch_operands = 0 : i64, tpu.core_type = #tpu.core_type<tc>, window_params = [{transform_indices = @transform_0, window_bounds = array<i64: 8, 16>}, {pipeline_mode = #tpu.pipeline_mode<synchronous>, transform_indices = @transform_1, window_bounds = array<i64: 16, 128>}, {pipeline_mode = #tpu.pipeline_mode<synchronous>, transform_indices = @transform_2, window_bounds = array<i64: 1, 128>}, {pipeline_mode = #tpu.pipeline_mode<synchronous>, transform_indices = @transform_3, window_bounds = array<i64: 128, 128>}, {pipeline_mode = #tpu.pipeline_mode<synchronous>, transform_indices = @transform_4, window_bounds = array<i64: 1, 128>}, {transform_indices = @transform_5, window_bounds = array<i64: 8, 128>}]} {
    %c0 = arith.constant 0 : index
    %c0_0 = arith.constant 0 : index
    %0 = vector.load %arg1[%c0, %c0_0] : memref<8x16xf32, #tpu.memory_space<vmem>>, vector<8x16xf32>
    %1 = arith.truncf %0 : vector<8x16xf32> to vector<8x16xbf16>
    %c0_1 = arith.constant 0 : index
    %c0_2 = arith.constant 0 : index
    %2 = vector.load %arg2[%c0_1, %c0_2] : memref<16x128xbf16, #tpu.memory_space<vmem>>, vector<16x128xbf16>
    %cst = arith.constant dense<0.000000e+00> : vector<8x128xf32>
    %3 = tpu.matmul %1, %2, %cst {dimension_numbers = #tpu.dot_dimension_numbers<[1], [0], [0], [1], [0, 0, 1, 1], [], []>} : vector<8x16xbf16>, vector<16x128xbf16>, vector<8x128xf32> -> vector<8x128xf32>
    %c0_3 = arith.constant 0 : index
    %c0_4 = arith.constant 0 : index
    %4 = vector.load %arg3[%c0_3, %c0_4] : memref<1x128xf32, #tpu.memory_space<vmem>>, vector<1x128xf32>
    %5 = vector.broadcast %4 : vector<1x128xf32> to vector<8x128xf32>
    %6 = arith.addf %3, %5 : vector<8x128xf32>
    %cst_5 = arith.constant 0.000000e+00 : f32
    %7 = vector.broadcast %cst_5 : f32 to vector<8x128xf32>
    %8 = arith.cmpf ogt, %6, %7 : vector<8x128xf32>
    %9 = math.exp %6 : vector<8x128xf32>
    %cst_6 = arith.constant 1.000000e+00 : f32
    %10 = vector.broadcast %cst_6 : f32 to vector<8x128xf32>
    %11 = arith.subf %9, %10 : vector<8x128xf32>
    %cst_7 = arith.constant 1.67326319 : f32
    %12 = vector.broadcast %cst_7 : f32 to vector<8x128xf32>
    %13 = arith.mulf %12, %11 : vector<8x128xf32>
    %14 = arith.select %8, %6, %13 : vector<8x128xi1>, vector<8x128xf32>
    %cst_8 = arith.constant 1.05070102 : f32
    %15 = vector.broadcast %cst_8 : f32 to vector<8x128xf32>
    %16 = arith.mulf %15, %14 : vector<8x128xf32>
    %17 = arith.truncf %16 : vector<8x128xf32> to vector<8x128xbf16>
    %c0_9 = arith.constant 0 : index
    %c0_10 = arith.constant 0 : index
    %18 = vector.load %arg4[%c0_9, %c0_10] : memref<128x128xbf16, #tpu.memory_space<vmem>>, vector<128x128xbf16>
    %cst_11 = arith.constant dense<0.000000e+00> : vector<8x128xf32>
    %19 = tpu.matmul %17, %18, %cst_11 {dimension_numbers = #tpu.dot_dimension_numbers<[1], [0], [0], [1], [0, 0, 1, 1], [], []>} : vector<8x128xbf16>, vector<128x128xbf16>, vector<8x128xf32> -> vector<8x128xf32>
    %c0_12 = arith.constant 0 : index
    %c0_13 = arith.constant 0 : index
    %20 = vector.load %arg5[%c0_12, %c0_13] : memref<1x128xf32, #tpu.memory_space<vmem>>, vector<1x128xf32>
    %21 = vector.broadcast %20 : vector<1x128xf32> to vector<8x128xf32>
    %22 = arith.addf %19, %21 : vector<8x128xf32>
    %cst_14 = arith.constant 0.000000e+00 : f32
    %23 = vector.broadcast %cst_14 : f32 to vector<8x128xf32>
    %24 = arith.cmpf ogt, %22, %23 : vector<8x128xf32>
    %25 = math.exp %22 : vector<8x128xf32>
    %cst_15 = arith.constant 1.000000e+00 : f32
    %26 = vector.broadcast %cst_15 : f32 to vector<8x128xf32>
    %27 = arith.subf %25, %26 : vector<8x128xf32>
    %cst_16 = arith.constant 1.67326319 : f32
    %28 = vector.broadcast %cst_16 : f32 to vector<8x128xf32>
    %29 = arith.mulf %28, %27 : vector<8x128xf32>
    %30 = arith.select %24, %22, %29 : vector<8x128xi1>, vector<8x128xf32>
    %cst_17 = arith.constant 1.05070102 : f32
    %31 = vector.broadcast %cst_17 : f32 to vector<8x128xf32>
    %32 = arith.mulf %31, %30 : vector<8x128xf32>
    %cst_18 = arith.constant 0.000000e+00 : f32
    %33 = vector.broadcast %cst_18 : f32 to vector<8x128xf32>
    %34 = arith.subf %33, %32 : vector<8x128xf32>
    %35 = math.exp %34 : vector<8x128xf32>
    %cst_19 = arith.constant 1.000000e+00 : f32
    %36 = vector.broadcast %cst_19 : f32 to vector<8x128xf32>
    %37 = arith.addf %36, %35 : vector<8x128xf32>
    %cst_20 = arith.constant 1.000000e+00 : f32
    %38 = vector.broadcast %cst_20 : f32 to vector<8x128xf32>
    %39 = arith.divf %38, %37 : vector<8x128xf32>
    %c0_21 = arith.constant 0 : index
    %c0_22 = arith.constant 0 : index
    %40 = vector.load %arg6[%c0_21, %c0_22] : memref<8x128xf32, #tpu.memory_space<vmem>>, vector<8x128xf32>
    tpu.vector_store %arg6[%c0_21, %c0_22], %39 {strides = array<i32>} : memref<8x128xf32, #tpu.memory_space<vmem>>, vector<8x128xf32>,
    return
  }
  func.func @transform_0(%arg0: i32) -> (i32, i32) {
    %c0_i32 = arith.constant 0 : i32
    %c0_i32_0 = arith.constant 0 : i32
    return %arg0, %c0_i32 : i32, i32
  }
  func.func @transform_1(%arg0: i32) -> (i32, i32) {
    %c0_i32 = arith.constant 0 : i32
    %c0_i32_0 = arith.constant 0 : i32
    %c0_i32_1 = arith.constant 0 : i32
    return %c0_i32, %c0_i32_0 : i32, i32
  }
  func.func @transform_2(%arg0: i32) -> (i32, i32) {
    %c0_i32 = arith.constant 0 : i32
    %c0_i32_0 = arith.constant 0 : i32
    %c0_i32_1 = arith.constant 0 : i32
    return %c0_i32, %c0_i32_0 : i32, i32
  }
  func.func @transform_3(%arg0: i32) -> (i32, i32) {
    %c0_i32 = arith.constant 0 : i32
    %c0_i32_0 = arith.constant 0 : i32
    %c0_i32_1 = arith.constant 0 : i32
    return %c0_i32, %c0_i32_0 : i32, i32
  }
  func.func @transform_4(%arg0: i32) -> (i32, i32) {
    %c0_i32 = arith.constant 0 : i32
    %c0_i32_0 = arith.constant 0 : i32
    %c0_i32_1 = arith.constant 0 : i32
    return %c0_i32, %c0_i32_0 : i32, i32
  }
  func.func @transform_5(%arg0: i32) -> (i32, i32) {
    %c0_i32 = arith.constant 0 : i32
    %c0_i32_0 = arith.constant 0 : i32
    return %arg0, %c0_i32 : i32, i32
  }
}

</mosaic_0001>

<bundles_post_ra>
// kernel: bernoulli_decoder_a8_forward.1
= control target key start
LH: loop header
LB: loop body
LE: loop exit
PB: predicated region body
PF: predicated region fallthrough
CT: control target
= control target key end

     0   :  { %10 = vsyncpa [#allocation3], 0  ;;  %s941_s0 = inlined_call_operand.hbm [shape: f32[16,16], index: 0, kind: input, shape index: {}]   ;;  %s942_s1 = inlined_call_operand.vmem [shape: bf16[16,128], index: 1, kind: input, shape index: {}]   ;;  %s943_s2 = inlined_call_operand.vmem [shape: f32[1,128], index: 2, kind: input, shape index: {}]   ;;  %s944_s3 = inlined_call_operand.hbm [shape: bf16[128,128], index: 3, kind: input, shape index: {}]   ;;  %s945_s4 = inlined_call_operand.vmem [shape: f32[1,128], index: 4, kind: input, shape index: {}]   ;;  %s946_s5 = inlined_call_operand.vmem [shape: f32[16,128], index: 5, kind: output, shape index: {}]  }
   0x1   :  { %12 = vsyncpa [#allocation3 + $0x1], 0 }
   0x2   :  { %13 = vsyncpa [#allocation5], 0  ;;  %s793_s18 = smov 0   ;;  %s795_s19 = smov 0  }
   0x3   :  { %s797_s20 = smov 0   ;;  %s799_s21 = smov 0  }
   0x4 LB: > { %s812_s22 = sadd.s32 4294967295, %s755_s21   ;;  %p39_p0 = scmp.ne.s32.totalorder %s747_s19, %s743_s18  ;;  %s755_s21 = sphi %s799_s21, %s962_s21   ;;  %s751_s20 = sphi %s797_s20, %s961_s20   ;;  %s747_s19 = sphi %s795_s19, %s960_s19   ;;  %s743_s18 = sphi %s793_s18, %s959_s18  }
   0x5   : > { %p947_p1 = scmp.eq.s32.totalorder %s812_s22, 0  ;;  %p526_p2 = scmp.ge.s32.totalorder %s755_s21, 1 }
   0x6   : > { %p160_p3 = scmp.lt.s32.totalorder %s755_s21, 3  ;;  %s757_s25 = smov [#allocation4]  }
   0x7   : > { %p820_p4 = por %p947_p1, %p39_p0  ;;  %s178_s26 = sshll.u32 %s757_s25, 4  ;;  %s179_s26 = int_to_ptr.vmem [resolvable:$true] %s178_s26 }
   0x8   : > { %p824_p5 = pnand %p526_p2, %p160_p3  ;;  %s837_s28 = sadd.s32 1, %s755_s21  }
   0x9   : > { %s950_s23 = scalar_select %p820_p4, 1, 0 }
   0xa   : > { %s951_s24 = scalar_select %p824_p5, 1, 0 }
   0xb   : > { %p594_p6 = pneg %p824_p5  ;;  %s26_s29 = sadd.s32 1, %s751_s20 }
   0xc   : > { %s23_s30 = ssub.s32 %s755_s21, %s837_s28  ;;  %s659_s8 = scalar_lea.hbm %s944_s3, 1024 }
   0xd   : > { %p832_p7 = pnand %p594_p6, %p947_p1  ;;  %p660_p8 = scmp.ne.s32.totalorder %s944_s3, %s659_s8 }
   0xe   : > { %p666_p12 = scmp.lt.u32.totalorder %s659_s8, %s944_s3 }
   0xf   : > { %p661_p9 = pneg %p832_p7 }
  0x11   : > { %p662_p10 = pnand %p661_p9, %p660_p8 }
  0x13   : > { %p663_p11 = pneg %p662_p10 }
  0x15   : > { %p668_p13 = pnand %p666_p12, %p663_p11 }
  0x17   : > { %671 = shalt.err (!%p668_p13)
}
  0x18   : > { %s672_s13 = scalar_lea.vmem %s179_s26, 1024  ;;  %p680_p6 = scmp.lt.s32.totalorder %s179_s26, %s179_s26 }
  0x19   : > { %p673_p0 = scmp.ne.s32.totalorder %s179_s26, %s672_s13  ;;  %p681_p1 = scmp.lt.s32.totalorder %s672_s13, %s672_s13 }
  0x1b   : > { %p675_p2 = pnand %p673_p0, %p661_p9  ;;  %p682_p4 = por %p681_p1, %p680_p6 }
  0x1d   : > { %p676_p3 = pneg %p675_p2 }
  0x1f   : > { %p683_p5 = pnand %p682_p4, %p676_p3 }
  0x21   : > { %686 = shalt.err (!%p683_p5)
}
  0x22   : > { %s758_s14 = smov 64   ;;  %s759_s15 = smov 4  }
  0x23   : > { %597 = dma.hbm_to_vmem [thread:$0]  (!%p832_p7), %s944_s3, 1024, %s179_s26, [#allocation5], %s758_s14, %s758_s14, %s759_s15  }
  0x24   : > { %p24_p8 = scmp.eq.s32.totalorder %s23_s30, 0  ;;  %p33_p9 = scmp.ne.s32.totalorder %s751_s20, %s747_s19 }
  0x25   : > { %p34_p1 = scmp.eq.s32.totalorder %s755_s21, 0  ;;  %p603_p4 = scmp.lt.s32.totalorder %s755_s21, 2 }
  0x26   : > { %s863_s18 = scalar_select %p24_p8, %s751_s20, %s26_s29  }
  0x27   : > { %p35_p5 = por %p34_p1, %p33_p9  ;;  %s195_s25 = sand.u32 1, %s751_s20  }
  0x28   : > { %s529_s6 = sshll.u32 %s195_s25, 3  ;;  %s530_s7 = sshll.u32 %s755_s21, 7 }
  0x29   : > { %s870_s10 = scalar_lea.hbm %s941_s0, %s530_s7  ;;  %s199_s26 = scalar_lea.vmem [#allocation2], %s529_s6 }
  0x2a   : > { %s206_s27 = sshll.u32 %s199_s26, 4  ;;  %p874_p7 = pnand %p603_p4, %p35_p5  ;;  %s872_s27 = int_to_ptr.vmem [resolvable:$true] %s206_s27 }
  0x2b   : > { %s196_s21 = scalar_lea.sflag [#allocation3], %s195_s25  ;;  %s687_s30 = scalar_lea.hbm %s870_s10, 128 }
  0x2c   : > { %p688_p10 = scmp.ne.s32.totalorder %s870_s10, %s687_s30  ;;  %p689_p11 = pneg %p874_p7 }
  0x2d   : > { %s692_s13 = scalar_lea.hbm %s941_s0, 256  ;;  %p693_p0 = scmp.lt.u32.totalorder %s870_s10, %s941_s0 }
  0x2e   : > { %p690_p12 = pnand %p689_p11, %p688_p10  ;;  %p694_p2 = scmp.lt.u32.totalorder %s692_s13, %s687_s30 }
  0x2f   : > { %p696_p6 = scmp.lt.u32.totalorder %s687_s30, %s870_s10 }
  0x30   : > { %p691_p13 = pneg %p690_p12  ;;  %p695_p3 = por %p694_p2, %p693_p0 }
  0x32   : > { %p697_p8 = por %p696_p6, %p695_p3 }
  0x34   : > { %p698_p9 = pnand %p697_p8, %p691_p13 }
  0x36   : > { %701 = shalt.err (!%p698_p9)
}
  0x37   : > { %s702_s16 = scalar_lea.vmem %s872_s27, 128  ;;  %s760_s17 = smov [#allocation2]  }
  0x38   : > { %p703_p1 = scmp.ne.s32.totalorder %s872_s27, %s702_s16  ;;  %s707_s25 = sshll.u32 %s760_s17, 4  ;;  %s708_s25 = int_to_ptr.vmem [resolvable:$false] %s707_s25 }
  0x39   : > { %s709_s6 = scalar_lea.vmem %s708_s25, 256  ;;  %p710_p10 = scmp.lt.s32.totalorder %s872_s27, %s708_s25 }
  0x3a   : > { %p705_p4 = pnand %p703_p1, %p689_p11  ;;  %p711_p12 = scmp.lt.s32.totalorder %s709_s6, %s702_s16 }
  0x3c   : > { %p706_p5 = pneg %p705_p4  ;;  %p712_p0 = por %p711_p12, %p710_p10 }
  0x3e   : > { %p713_p2 = pnand %p712_p0, %p706_p5 }
  0x40   : > { %716 = shalt.err (!%p713_p2)
}
  0x41   : > { %601 = dma.hbm_to_vmem [thread:$0]  (!%p874_p7), %s870_s10, 128, %s872_s27, %s196_s21  }
  0x42   : > { %p954_p13 = scmp.ne.s32.totalorder %s951_s24, 0 }
  0x43   : > { %s217_s7 = sand.u32 (!%p954_p13), 1, %s747_s19   ;;  %p955_p11 = scmp.ne.s32.totalorder (!%p954_p13), %s950_s23, 0 }
  0x44   : > { %215 = sbr.rel (%p954_p13) target bundleno = 584 (0x248), region = 40  ;;  %s532_s8 = sshll.u32 (!%p954_p13), %s217_s7, 3 }
  0x45   : > { %s218_s9 = scalar_lea.sflag (!%p954_p13), [#allocation3], %s217_s7  ;;  %s221_s26 = scalar_lea.vmem (!%p954_p13), [#allocation2], %s532_s8 }
  0x4b   : > { %734 = dma.done.wait (%p955_p11), %s218_s9, 128  }
  0x4c   : > { %736 = vsyncadd (%p955_p11), %s218_s9, 4294967168  ;;  %p956_p3 = scmp.eq.s32.totalorder %s812_s22, 0 }
  0x4e   : > { %738 = dma.done.wait (%p956_p3), [#allocation5], 1024   ;;  %p957_p6 = pmov %p956_p3 }
  0x4f   : > { %v761_v0 = vmov 0.0   ;;  %vm762_vm0 = vmmov 0   ;;  %v642_v1 = vld [vmem:[%s942_s1] sm:$0xff]   ;;  %vm273_vm1 = vcmask 130048   ;;  %v643_v4 = vld [vmem:[#allocation4] sm:$0xff]   ;;  %v644_v5 = vld [vmem:[#allocation4 + $0x8] sm:$0xff]  }
  0x50   : > { %740 = vsyncadd (%p957_p6), [#allocation5], 4294966272  ;;  %562 = vmatprep.subr.bf16.mxu0 %v761_v0  ;;  %564 = vmatprep.mubr.msk.bf16.mxu0 %vm762_vm0, %v761_v0  ;;  %v256_v2 = vld [vmem:[%s221_s26] sm:$0xff]  ;;  %v647_v8 = vld [vmem:[#allocation4 + $0x20] sm:$0xff]   ;;  %p251_p7 = scmp.lt.s32.totalorder %s812_s22, 1 }
  0x51   : > { %568 = vmatprep.subr.bf16.mxu1 %v761_v0  ;;  %584 = vmatprep.mubr.msk.bf16.mxu1 %vm762_vm0, %v761_v0  ;;  %v257_v3 = vpack.c.bf16 %v256_v2, %v256_v2  ;;  %v645_v6 = vld [vmem:[#allocation4 + $0x10] sm:$0xff]   ;;  %v646_v7 = vld [vmem:[#allocation4 + $0x18] sm:$0xff]   ;;  %v648_v9 = vld [vmem:[#allocation4 + $0x28] sm:$0xff]  }
  0x52   : > { %563 = vmatpush3.bf16.msra.mxu0 %v642_v1  ;;  %569 = vmatpush3.bf16.msra.mxu1 %v643_v4  ;;  %v649_v10 = vld [vmem:[#allocation4 + $0x30] sm:$0xff]   ;;  %v650_v11 = vld [vmem:[#allocation4 + $0x38] sm:$0xff]   ;;  %s964_s22 = smov (!%p251_p7, %s812_s22), 1 }
  0x53   : > { %570 = vmatprep.subr.bf16.mxu1 %v761_v0  ;;  %v535_v12 = vld [vmem:[%s943_s2] ss:$0 sm:$0xff]  ;;  %s534_s30 = sshll.u32 %s964_s22, 3 }
  0x54   : > { %v539_v25 = vld [vmem:[%s945_s4] ss:$0 sm:$0xff]  ;;  %s254_s13 = scalar_lea.vmem %s946_s5, %s534_s30 }
  0x55   : > { %565 = vmatmul.mubr.msk.bf16.vlgmr.msra.gmra.mrb[0].mxu0 %vm273_vm1, %v257_v3 }
  0x56   : > { %571 = vmatpush3.bf16.msra.mxu1 %v644_v5 }
  0x57   : > { %572 = vmatprep.subr.bf16.mxu1 %v761_v0 }
  0x5a   : > { %573 = vmatpush3.bf16.msra.mxu1 %v645_v6 }
  0x5b   : > { %574 = vmatprep.subr.bf16.mxu1 %v761_v0 }
  0x5e   : > { %575 = vmatpush3.bf16.msra.mxu1 %v646_v7 }
  0x5f   : > { %576 = vmatprep.subr.bf16.mxu1 %v761_v0 }
  0x62   : > { %577 = vmatpush3.bf16.msra.mxu1 %v647_v8 }
  0x63   : > { %578 = vmatprep.subr.bf16.mxu1 %v761_v0 }
  0x66   : > { %579 = vmatpush3.bf16.msra.mxu1 %v648_v9 }
  0x67   : > { %580 = vmatprep.subr.bf16.mxu1 %v761_v0 }
  0x6a   : > { %581 = vmatpush3.bf16.msra.mxu1 %v649_v10 }
  0x6b   : > { %582 = vmatprep.subr.bf16.mxu1 %v761_v0 }
  0x6e   : > { %583 = vmatpush3.bf16.msra.mxu1 %v650_v11 }
 0x128   : > { %v311_v13 = vpop.f32.mrb[0].mxu0 }
 0x129   : > { %v312_v14 = vadd.f32 %v535_v12, %v311_v13  ;;  %v566_v15 = vpop.f32.mrb[1].mxu0 }
 0x12a   : > { %v314_v16 = vpop.f32.mrb[2].mxu0 }
 0x12b   : > { %v318_v17 = vmul.f32 1.442695, %v312_v14  ;;  %v567_v18 = vpop.f32.mrb[3].mxu0  ;;  %vm317_vm2 = vcmp.gt.f32.partialorder %v312_v14, 0.0 }
 0x12d   : > { %651 = vpow2.f32 %v318_v17 }
 0x137   : > { %v652_v19 = vpop.eup %651 }
 0x138   : > { %v538_v20 = vadd.f32 -1.0, %v652_v19 }
 0x13a   : > { %v321_v21 = vmul.f32 1.6732632, %v538_v20 }
 0x13c   : > { %v322_v22 = vsel %vm317_vm2, %v312_v14, %v321_v21 }
 0x13d   : > { %v323_v23 = vmul.f32 1.050701, %v322_v22 }
 0x13f   : > { %v324_v24 = vpack.c.bf16 %v323_v23, %v323_v23 }
 0x141   : > { %585 = vmatmul.mubr.bf16.vlgmr.msra.gmra.mrb[0].mxu1 %v324_v24 }
 0x214   : > { %v430_v26 = vpop.f32.mrb[0].mxu1 }
 0x215   : > { %v431_v27 = vadd.f32 %v539_v25, %v430_v26  ;;  %v586_v28 = vpop.f32.mrb[1].mxu1 }
 0x216   : > { %v433_v29 = vpop.f32.mrb[2].mxu1 }
 0x217   : > { %v437_v30 = vmul.f32 1.442695, %v431_v27  ;;  %v587_v31 = vpop.f32.mrb[3].mxu1  ;;  %vm436_vm3 = vcmp.gt.f32.partialorder %v431_v27, 0.0 }
 0x219   : > { %653 = vpow2.f32 %v437_v30 }
 0x223   : > { %v654_v32 = vpop.eup %653 }
 0x224   : > { %v548_v33 = vadd.f32 -1.0, %v654_v32 }
 0x226   : > { %v440_v34 = vmul.f32 1.6732632, %v548_v33 }
 0x228   : > { %v441_v35 = vsel %vm436_vm3, %v431_v27, %v440_v34 }
 0x229   : > { %v442_v36 = vmul.f32 1.050701, %v441_v35 }
 0x22b   : > { %v443_v37 = vsub.f32 0.0, %v442_v36 }
 0x22d   : > { %v444_v38 = vmul.f32 1.442695, %v443_v37 }
 0x22f   : > { %655 = vpow2.f32 %v444_v38 }
 0x239   : > { %v656_v39 = vpop.eup %655 }
 0x23a   : > { %v446_v40 = vadd.f32 1.0, %v656_v39 }
 0x23c   : > { %657 = vrcp.f32 %v446_v40 }
 0x246   : > { %v658_v41 = vpop.eup %657 }
 0x247   : > { %449 = vst [vmem:[%s254_s13] sm:$0xff] %v658_v41 }
 0x248 PF: > { %s958_s14 = smov %s863_s18  ;;  %p16_p8 = scmp.ge.s32.totalorder %s837_s28, 4  }
 0x249   : > { %s959_s18 = smov %s747_s19  ;;  %s960_s19 = smov %s751_s20 }
 0x24a   : > { %s961_s20 = smov %s958_s14  ;;  %s962_s21 = smov %s837_s28 }
 0x24b   :  { %18 = sbr.rel (!%p16_p8) target bundleno = 4 (0x4), region = 84 }
 0x252   :  { %469 = vsyncpa [#allocation3], 1 }
 0x253   :  { %471 = vsyncpa [#allocation3 + $0x1], 1 }
 0x254   :  { %472 = vsyncpa [#allocation5], 1 }

</bundles_post_ra>
